<compile_context>
chip_gen: v7x
topology: tpu7x:2x2x1
jax: 0.10.0
libtpu: 0.0.40
codegen_flags: <defaults>
</compile_context>

<pallas_src>
import numpy as np
import jax
import jax.numpy as jnp
from jax import lax
from jax.experimental import pallas as pl
from jax.experimental.pallas import tpu as pltpu


# ----------------------------------------------------------------------------
# Small host-side helpers
# ----------------------------------------------------------------------------
def _round_up(n, m):
    return ((n + m - 1) // m) * m


def _pick_tile(n, candidates):
    """Largest candidate dividing n that still leaves >=2 tiles (megacore-friendly)."""
    for c in candidates:
        if n % c == 0 and n // c >= 2:
            return c
    return n


def _pick_k_block(h):
    """Large K blocks (fewer K steps), but keep double-buffered bf16 w1 block <=16 MiB."""
    budget = 16 * 1024 * 1024
    for c in (1024, 512, 256, 128):
        if h % c == 0 and h > c and 2 * c * h * 2 <= budget:
            return c
    return h


# ----------------------------------------------------------------------------
# Host-side glue (data-dependent output shapes -> cannot be traced in JAX)
# ----------------------------------------------------------------------------
def extract_input_and_output_segments_np(tensor, pad_token_id=0):
    tensor = np.asarray(tensor)
    B, T = tensor.shape
    non_pad = (tensor != pad_token_id).astype(np.int32)
    changes = np.concatenate([np.zeros((B, 1), np.int32), non_pad], axis=1)
    diff = changes[:, 1:] - changes[:, :-1]
    starts = np.argwhere(diff == 1)                       # sorted row-major, like torch.nonzero
    counts = np.bincount(starts[:, 0], minlength=B)
    assert (counts >= 2).all(), "Each row must have at least two segments"
    row_offsets = np.zeros(B, dtype=np.int64)
    unique_rows, first_idx = np.unique(starts[:, 0], return_index=True)
    row_offsets[unique_rows] = first_idx
    first_starts = starts[row_offsets, 1]
    second_starts = starts[row_offsets + 1, 1]
    input_len = int((second_starts - first_starts).min())
    lengths = [int((tensor[b, s:] != pad_token_id).sum())
               for b, s in zip(range(B), second_starts)]
    output_len = max(lengths)
    idx_in = np.arange(input_len)[None, :]
    idx_out = np.arange(output_len)[None, :]
    batch_idx = np.arange(B)[:, None]
    input_idx = np.clip(first_starts[:, None] + idx_in, None, T - 1)
    output_idx = np.clip(second_starts[:, None] + idx_out, None, T - 1)
    return tensor[batch_idx, input_idx], tensor[batch_idx, output_idx]


def first_true_indices_np(bools):
    # matches trl.first_true_indices: row_len if no True in the row
    bools = np.asarray(bools)
    row_len = bools.shape[-1]
    zero_or_index = row_len * (~bools).astype(np.int64) + np.arange(row_len)
    return zero_or_index.min(axis=-1)


# ----------------------------------------------------------------------------
# Pallas kernel 1: forward() preprocessing on the extracted `labels` segment
#   attention_mask = labels != 0
#   position_ids   = attention_mask.cumsum(1) - attention_mask
#   input_ids      = masked_fill(labels, ~attention_mask, 0)
# Blocked cumsum: per (block_b, block_l) tile an intra-tile inclusive cumsum via a
# small bf16 triangular matmul (exact: 0/1 inputs, f32 accumulation, counts <= 2^24)
# against a HOST-PRECOMPUTED, grid-invariant triangular matrix, plus a per-row
# running-sum carry kept in a VMEM scratch across L tiles.
# ----------------------------------------------------------------------------
def _preprocess_kernel(labels_ref, tri_ref, ids_ref, attn_ref, pos_ref, carry_ref):
    l_idx = pl.program_id(1)

    @pl.when(l_idx == 0)
    def _():
        carry_ref[...] = jnp.zeros_like(carry_ref)

    labels = labels_ref[...]                               # (bb, bl) int32
    mask = labels != 0
    mask_i = mask.astype(jnp.int32)

    # intra-tile inclusive cumsum along the lane axis via bf16 tri matmul (MXU);
    # tri is grid-invariant (constant index_map -> stays resident in VMEM)
    local = jnp.dot(mask.astype(jnp.bfloat16), tri_ref[...],
                    preferred_element_type=jnp.float32).astype(jnp.int32)
    csum = local + carry_ref[...]                          # add carry from previous tiles

    attn_ref[...] = mask_i                                 # bool mask emitted as int32 0/1
    pos_ref[...] = csum - mask_i
    ids_ref[...] = jnp.where(mask, labels, 0)

    carry_ref[...] = csum[:, -1:]                          # running total after this tile


def preprocess_pallas(labels):
    labels = jnp.asarray(labels, jnp.int32)
    B, L = labels.shape
    B_pad = _round_up(B, 8)
    L_pad = _round_up(L, 128)                              # lane-dense + shape bucketing
    labels_p = jnp.pad(labels, ((0, B_pad - B), (0, L_pad - L)))

    block_b = _pick_tile(B_pad, (512, 256, 128, 64, 32, 16, 8))
    # grow the L tile only when the B tile is tiny (per-step traffic vs O(block_l) MXU cost)
    l_cands = (1024, 512, 256, 128) if block_b <= 16 else (512, 256, 128)
    block_l = _pick_tile(L_pad, l_cands) if L_pad // 128 >= 2 else L_pad
    grid = (B_pad // block_b, L_pad // block_l)

    # host-precomputed inclusive-cumsum matrix (upper triangular incl. diagonal)
    tri = jnp.asarray(np.triu(np.ones((block_l, block_l), np.float32)), jnp.bfloat16)

    spec = pl.BlockSpec((block_b, block_l), lambda b, l: (b, l))
    tri_spec = pl.BlockSpec((block_l, block_l), lambda b, l: (0, 0))   # grid-invariant
    ids, attn, pos = pl.pallas_call(
        _preprocess_kernel,
        out_shape=(jax.ShapeDtypeStruct((B_pad, L_pad), jnp.int32),
                   jax.ShapeDtypeStruct((B_pad, L_pad), jnp.int32),
                   jax.ShapeDtypeStruct((B_pad, L_pad), jnp.int32)),
        grid_spec=pltpu.PrefetchScalarGridSpec(
            num_scalar_prefetch=0,
            grid=grid,
            in_specs=[spec, tri_spec],
            out_specs=(spec, spec, spec),
            scratch_shapes=[pltpu.VMEM((block_b, 1), jnp.int32)]),
        compiler_params=pltpu.CompilerParams(
            dimension_semantics=("parallel", "arbitrary"),   # L axis carries the cumsum state
            vmem_limit_bytes=32 * 1024 * 1024),
    )(labels_p, tri)
    return ids[:B, :L], attn[:B, :L], pos[:B, :L]


# ----------------------------------------------------------------------------
# Pallas kernel 2: score() classifier head
#   x = tanh(dense(cls)); x = dropout(x) [eval -> identity]; logits = out_proj(x)
# 2-D grid: B tiles ("parallel", feeds v7x megacore) x K tiles ("arbitrary").
# The f32 accumulator is (block_b, H); dense + out_proj matmul operands are bf16
# (f32 accumulation); tanh / bias-add stay in f32.
# Masked path: out_proj is sliced to column 0 (padded to one 128-lane slab) and the
# (B, L) broadcast-and-mask epilogue is done in XLA on the resulting (B,) column.
# ----------------------------------------------------------------------------
def _score_kernel(cls_ref, w1_ref, b1_ref, w2_ref, b2_ref, out_ref, acc_ref):
    k = pl.program_id(1)

    @pl.when(k == 0)
    def _():
        acc_ref[...] = jnp.zeros_like(acc_ref)

    acc_ref[...] += jnp.dot(cls_ref[...], w1_ref[...],
                            preferred_element_type=jnp.float32)

    @pl.when(k == pl.num_programs(1) - 1)
    def _():
        x = jnp.tanh(acc_ref[...] + b1_ref[...])                     # f32, (block_b, H)
        # dropout is identity in eval mode
        out_ref[...] = (jnp.dot(x.astype(jnp.bfloat16), w2_ref[...],
                                preferred_element_type=jnp.float32)
                        + b2_ref[...])


def _score_call(cls_bf, w1_bf, b1_r, w2_bf, b2_r):
    B_pad, H = cls_bf.shape
    N_pad = w2_bf.shape[1]
    block_b = _pick_tile(B_pad, (256, 128, 64, 32, 16, 8))
    block_k = _pick_k_block(H)
    grid = (B_pad // block_b, H // block_k)
    return pl.pallas_call(
        _score_kernel,
        out_shape=jax.ShapeDtypeStruct((B_pad, N_pad), jnp.float32),
        grid_spec=pltpu.PrefetchScalarGridSpec(
            num_scalar_prefetch=0,
            grid=grid,
            in_specs=[
                pl.BlockSpec((block_b, block_k), lambda b, k: (b, k)),   # cls (bf16)
                pl.BlockSpec((block_k, H), lambda b, k: (k, 0)),         # w1  (bf16)
                pl.BlockSpec((1, H), lambda b, k: (0, 0)),               # b1  (f32)
                pl.BlockSpec((H, N_pad), lambda b, k: (0, 0)),           # w2  (bf16)
                pl.BlockSpec((1, N_pad), lambda b, k: (0, 0)),           # b2  (f32)
            ],
            out_specs=pl.BlockSpec((block_b, N_pad), lambda b, k: (b, 0)),
            scratch_shapes=[pltpu.VMEM((block_b, H), jnp.float32)]),
        compiler_params=pltpu.CompilerParams(
            dimension_semantics=("parallel", "arbitrary"),
            vmem_limit_bytes=64 * 1024 * 1024),
    )(cls_bf, w1_bf, b1_r, w2_bf, b2_r)


def score_pallas(cls_hidden, w1, b1, w2, b2, seq_lengths=None):
    cls_hidden = jnp.asarray(cls_hidden, jnp.float32)
    B, H = cls_hidden.shape
    B_pad = _round_up(B, 8)

    # bf16 matmul operands (f32 accumulation inside the kernel)
    cls_bf = jnp.pad(cls_hidden, ((0, B_pad - B), (0, 0))).astype(jnp.bfloat16)
    w1_bf = jnp.asarray(w1, jnp.float32).astype(jnp.bfloat16)
    b1_r = jnp.asarray(b1, jnp.float32).reshape(1, H)
    w2_f = jnp.asarray(w2, jnp.float32)
    b2_f = jnp.asarray(b2, jnp.float32)

    if seq_lengths is None:
        N = int(w2_f.shape[1])
        N_pad = _round_up(N, 128)                          # lane-dense output
        w2_p = jnp.pad(w2_f, ((0, 0), (0, N_pad - N))).astype(jnp.bfloat16)
        b2_p = jnp.pad(b2_f.reshape(1, N), ((0, 0), (0, N_pad - N)))
        out = _score_call(cls_bf, w1_bf, b1_r, w2_p, b2_p)
        return out[:B, :N]

    # masked path: only out_proj column 0 is needed -> stream one 128-lane slab
    seq = np.asarray(seq_lengths)
    L = int(seq.max()) + 1
    w2_col = jnp.pad(w2_f[:, 0:1], ((0, 0), (0, 127))).astype(jnp.bfloat16)   # (H, 128)
    b2_col = jnp.pad(b2_f[0:1].reshape(1, 1), ((0, 0), (0, 127)))             # (1, 128)
    out = _score_call(cls_bf, w1_bf, b1_r, w2_col, b2_col)
    logit0 = out[:B, 0:1]                                                     # (B, 1)
    # broadcast-and-mask epilogue in XLA (pure HBM-write broadcast; per perf review)
    keep = (jnp.arange(L, dtype=jnp.int32)[None, :]
            >= jnp.asarray(seq, jnp.int32)[:, None]).astype(jnp.float32)
    return keep * logit0


# ----------------------------------------------------------------------------
# ModelWrapper equivalent
# ----------------------------------------------------------------------------
class ModelWrapperPallas:
    def __init__(self, params):
        self.params = params            # classifier head weights (dense + out_proj)
        self.sequence_lengths = None

    def forward(self, input_ids):
        inputs_, labels_np = extract_input_and_output_segments_np(np.asarray(input_ids), 0)
        labels = jnp.asarray(labels_np, jnp.int32)
        new_ids, attn_mask, pos_ids = preprocess_pallas(labels)
        self.sequence_lengths = (
            inputs_.shape[1] + first_true_indices_np(labels_np == 0) - 1
        )
        # TODO(synk): `self._modules['model'](...)` (the HF backbone) is external; skipped.
        return new_ids, attn_mask, pos_ids

    def score(self, encoder_last_hidden_states):
        cls_hidden = encoder_last_hidden_states[:, 0, :]   # glue slice
        w1, b1, w2, b2 = (self.params[k] for k in ("w1", "b1", "w2", "b2"))
        out = score_pallas(cls_hidden, w1, b1, w2, b2, self.sequence_lengths)
        self.sequence_lengths = None
        return out


# ----------------------------------------------------------------------------
if __name__ == "__main__":
    B, T, S, H, NUM_LABELS = 2, 16, 8, 32, 2

    # token ids: each row has two non-pad segments separated by pad (0)
    input_ids = np.zeros((B, T), dtype=np.int32)
    input_ids[0, 1:4] = [5, 6, 7]
    input_ids[0, 6:10] = [9, 8, 7, 6]
    input_ids[1, 0:2] = [3, 4]
    input_ids[1, 4:7] = [2, 2, 2]

    key = jax.random.PRNGKey(0)
    k1, k2, k3, k4, k5 = jax.random.split(key, 5)
    params = {
        "w1": jax.random.normal(k1, (H, H), jnp.float32) * 0.05,
        "b1": jax.random.normal(k2, (H,), jnp.float32) * 0.01,
        "w2": jax.random.normal(k3, (H, NUM_LABELS), jnp.float32) * 0.05,
        "b2": jax.random.normal(k4, (NUM_LABELS,), jnp.float32) * 0.01,
    }
    hidden = jax.random.normal(k5, (B, S, H), jnp.float32)

    wrapper = ModelWrapperPallas(params)

    # forward(): segment extraction + mask / position_ids / masked input_ids
    new_ids, attn_mask, pos_ids = jax.block_until_ready(wrapper.forward(input_ids))

    # reference check for preprocessing (exact integer outputs)
    _, labels_np = extract_input_and_output_segments_np(input_ids, 0)
    mask_ref = (labels_np != 0).astype(np.int32)
    pos_ref = mask_ref.cumsum(axis=1) - mask_ref
    ids_ref = np.where(mask_ref.astype(bool), labels_np, 0)
    assert np.array_equal(np.asarray(attn_mask), mask_ref)
    assert np.array_equal(np.asarray(pos_ids), pos_ref)
    assert np.array_equal(np.asarray(new_ids), ids_ref)

    seq_lengths = wrapper.sequence_lengths.copy()

    # score(): classifier head + sequence_lengths masking (masked path)
    out = jax.block_until_ready(wrapper.score(hidden))

    # reference check (dense + out_proj operands are intentionally bf16-rounded)
    def _bf16(a):
        return np.asarray(jnp.asarray(a, jnp.bfloat16).astype(jnp.float32))

    cls = np.asarray(hidden[:, 0, :])
    w1_np, b1_np = np.asarray(params["w1"]), np.asarray(params["b1"])
    w2_np, b2_np = np.asarray(params["w2"]), np.asarray(params["b2"])
    x_ref = np.tanh(_bf16(cls) @ _bf16(w1_np) + b1_np)
    logits_ref = _bf16(x_ref) @ _bf16(w2_np) + b2_np
    logit0_ref = logits_ref[:, 0]
    L = int(seq_lengths.max()) + 1
    keep = (np.arange(L)[None, :] >= seq_lengths[:, None]).astype(np.float32)
    out_ref = keep * logit0_ref[:, None]
    assert out.shape == (B, L)
    assert np.allclose(np.asarray(out), out_ref, rtol=2e-2, atol=2e-2)

    # score() again: sequence_lengths was consumed -> unmasked path
    out2 = jax.block_until_ready(wrapper.score(hidden))
    assert out2.shape == (B, NUM_LABELS)
    assert np.allclose(np.asarray(out2), logits_ref, rtol=2e-2, atol=2e-2)

    print("KERNEL_OK")
</pallas_src>

<mosaic_0001>
module attributes {stable_mosaic.version = 11 : i64} {
  func.func @_preprocess_kernel(%arg0: i32, %arg1: i32, %arg2: memref<8x128xi32, #tpu.memory_space<vmem>>, %arg3: memref<128x128xbf16, #tpu.memory_space<vmem>>, %arg4: memref<8x128xi32, #tpu.memory_space<vmem>>, %arg5: memref<8x128xi32, #tpu.memory_space<vmem>>, %arg6: memref<8x128xi32, #tpu.memory_space<vmem>>, %arg7: memref<8x1xi32, #tpu.memory_space<vmem>>) attributes {dimension_semantics = [#tpu.dimension_semantics<parallel>, #tpu.dimension_semantics<arbitrary>], iteration_bounds = array<i64: 1, 1>, scalar_prefetch = 0 : i64, scratch_operands = 1 : i64, tpu.core_type = #tpu.core_type<tc>, window_params = [{transform_indices = @transform_0, window_bounds = array<i64: 8, 128>}, {pipeline_mode = #tpu.pipeline_mode<synchronous>, transform_indices = @transform_1, window_bounds = array<i64: 128, 128>}, {transform_indices = @transform_2, window_bounds = array<i64: 8, 128>}, {transform_indices = @transform_3, window_bounds = array<i64: 8, 128>}, {transform_indices = @transform_4, window_bounds = array<i64: 8, 128>}]} {
    %c0_i32 = arith.constant 0 : i32
    %0 = arith.cmpi eq, %arg1, %c0_i32 : i32
    %1 = arith.extui %0 : i1 to i32
    %c0_i32_0 = arith.constant 0 : i32
    %2 = arith.cmpi ne, %1, %c0_i32_0 : i32
    scf.if %2 {
      %c0_i32_16 = arith.constant 0 : i32
      %24 = vector.broadcast %c0_i32_16 : i32 to vector<8x1xi32>
      %c0_17 = arith.constant 0 : index
      %c0_18 = arith.constant 0 : index
      %25 = vector.load %arg7[%c0_17, %c0_18] : memref<8x1xi32, #tpu.memory_space<vmem>>, vector<8x1xi32>
      tpu.vector_store %arg7[%c0_17, %c0_18], %24 {strides = array<i32>} : memref<8x1xi32, #tpu.memory_space<vmem>>, vector<8x1xi32>,
    } else {
    }
    %c0 = arith.constant 0 : index
    %c0_1 = arith.constant 0 : index
    %3 = vector.load %arg2[%c0, %c0_1] : memref<8x128xi32, #tpu.memory_space<vmem>>, vector<8x128xi32>
    %c0_i32_2 = arith.constant 0 : i32
    %4 = vector.broadcast %c0_i32_2 : i32 to vector<8x128xi32>
    %5 = arith.cmpi ne, %3, %4 : vector<8x128xi32>
    %6 = arith.extui %5 : vector<8x128xi1> to vector<8x128xi32>
    %7 = arith.extui %5 : vector<8x128xi1> to vector<8x128xi32>
    %8 = arith.sitofp %7 : vector<8x128xi32> to vector<8x128xf32>
    %9 = arith.truncf %8 : vector<8x128xf32> to vector<8x128xbf16>
    %c0_3 = arith.constant 0 : index
    %c0_4 = arith.constant 0 : index
    %10 = vector.load %arg3[%c0_3, %c0_4] : memref<128x128xbf16, #tpu.memory_space<vmem>>, vector<128x128xbf16>
    %cst = arith.constant dense<0.000000e+00> : vector<8x128xf32>
    %11 = tpu.matmul %9, %10, %cst {dimension_numbers = #tpu.dot_dimension_numbers<[1], [0], [0], [1], [0, 0, 1, 1], [], []>} : vector<8x128xbf16>, vector<128x128xbf16>, vector<8x128xf32> -> vector<8x128xf32>
    %12 = arith.fptosi %11 : vector<8x128xf32> to vector<8x128xi32>
    %c0_5 = arith.constant 0 : index
    %c0_6 = arith.constant 0 : index
    %13 = vector.load %arg7[%c0_5, %c0_6] : memref<8x1xi32, #tpu.memory_space<vmem>>, vector<8x1xi32>
    %14 = vector.broadcast %13 : vector<8x1xi32> to vector<8x128xi32>
    %15 = arith.addi %12, %14 : vector<8x128xi32>
    %c0_7 = arith.constant 0 : index
    %c0_8 = arith.constant 0 : index
    %16 = vector.load %arg5[%c0_7, %c0_8] : memref<8x128xi32, #tpu.memory_space<vmem>>, vector<8x128xi32>
    tpu.vector_store %arg5[%c0_7, %c0_8], %6 {strides = array<i32>} : memref<8x128xi32, #tpu.memory_space<vmem>>, vector<8x128xi32>,
    %17 = arith.subi %15, %6 : vector<8x128xi32>
    %c0_9 = arith.constant 0 : index
    %c0_10 = arith.constant 0 : index
    %18 = vector.load %arg6[%c0_9, %c0_10] : memref<8x128xi32, #tpu.memory_space<vmem>>, vector<8x128xi32>
    tpu.vector_store %arg6[%c0_9, %c0_10], %17 {strides = array<i32>} : memref<8x128xi32, #tpu.memory_space<vmem>>, vector<8x128xi32>,
    %c0_i32_11 = arith.constant 0 : i32
    %19 = vector.broadcast %c0_i32_11 : i32 to vector<8x128xi32>
    %20 = arith.select %5, %3, %19 : vector<8x128xi1>, vector<8x128xi32>
    %c0_12 = arith.constant 0 : index
    %c0_13 = arith.constant 0 : index
    %21 = vector.load %arg4[%c0_12, %c0_13] : memref<8x128xi32, #tpu.memory_space<vmem>>, vector<8x128xi32>
    tpu.vector_store %arg4[%c0_12, %c0_13], %20 {strides = array<i32>} : memref<8x128xi32, #tpu.memory_space<vmem>>, vector<8x128xi32>,
    %22 = vector.extract_strided_slice %15 {offsets = [0, 127], sizes = [8, 1], strides = [1, 1]} : vector<8x128xi32> to vector<8x1xi32>
    %c0_14 = arith.constant 0 : index
    %c0_15 = arith.constant 0 : index
    %23 = vector.load %arg7[%c0_14, %c0_15] : memref<8x1xi32, #tpu.memory_space<vmem>>, vector<8x1xi32>
    tpu.vector_store %arg7[%c0_14, %c0_15], %22 {strides = array<i32>} : memref<8x1xi32, #tpu.memory_space<vmem>>, vector<8x1xi32>,
    return
  }
  func.func @transform_0(%arg0: i32, %arg1: i32) -> (i32, i32) {
    %c0_i32 = arith.constant 0 : i32
    return %arg0, %arg1 : i32, i32
  }
  func.func @transform_1(%arg0: i32, %arg1: i32) -> (i32, i32) {
    %c0_i32 = arith.constant 0 : i32
    %c0_i32_0 = arith.constant 0 : i32
    %c0_i32_1 = arith.constant 0 : i32
    return %c0_i32, %c0_i32_0 : i32, i32
  }
  func.func @transform_2(%arg0: i32, %arg1: i32) -> (i32, i32) {
    %c0_i32 = arith.constant 0 : i32
    return %arg0, %arg1 : i32, i32
  }
  func.func @transform_3(%arg0: i32, %arg1: i32) -> (i32, i32) {
    %c0_i32 = arith.constant 0 : i32
    return %arg0, %arg1 : i32, i32
  }
  func.func @transform_4(%arg0: i32, %arg1: i32) -> (i32, i32) {
    %c0_i32 = arith.constant 0 : i32
    return %arg0, %arg1 : i32, i32
  }
}

</mosaic_0001>

<bundles_post_ra>
// kernel: tpu_custom_call.1
= control target key start
LH: loop header
LB: loop body
LE: loop exit
PB: predicated region body
PF: predicated region fallthrough
CT: control target
= control target key end

     0   :  { %10 = vsyncpa [#allocation4], 0  ;;  %s502_s0 = inlined_call_operand.hbm [shape: s32[8,128], index: 0, kind: input, shape index: {}]   ;;  %s503_s1 = inlined_call_operand.hbm [shape: bf16[128,128], index: 1, kind: input, shape index: {}]   ;;  %s504_s2 = inlined_call_operand.hbm [shape: s32[8,128], index: 2, kind: output, shape index: {0}]   ;;  %s505_s3 = inlined_call_operand.hbm [shape: s32[8,128], index: 3, kind: output, shape index: {1}]   ;;  %s506_s4 = inlined_call_operand.hbm [shape: s32[8,128], index: 4, kind: output, shape index: {2}]  }
   0x1   :  { %11 = vsyncpa [#allocation7], 0 }
   0x2   :  { %12 = vsyncpa [#allocation5], 0 }
   0x3   :  { %13 = vsyncpa [#allocation10], 0  ;;  %s396_s15 = smov [#allocation3]   ;;  %s397_s17 = smov [#allocation6]  }
   0x4   :  { %s20_s16 = sshll.u32 %s396_s15, 4  ;;  %s29_s18 = sshll.u32 %s397_s17, 4  ;;  %s21_s16 = int_to_ptr.vmem [resolvable:$true] %s20_s16  ;;  %s433_s18 = int_to_ptr.vmem [resolvable:$true] %s29_s18 }
   0x5   :  { %s278_s21 = scalar_lea.hbm %s502_s0, 128 }
   0x6   :  { %p279_p0 = scmp.ne.s32.totalorder %s502_s0, %s278_s21  ;;  %p282_p1 = scmp.lt.u32.totalorder %s278_s21, %s502_s0 }
   0x8   :  { %p284_p2 = pnand %p282_p1, %p279_p0 }
   0xa   :  { %287 = shalt.err (!%p284_p2)
}
   0xb   :  { %s288_s26 = scalar_lea.vmem %s21_s16, 128  ;;  %p293_p4 = scmp.lt.s32.totalorder %s21_s16, %s21_s16 }
   0xc   :  { %p289_p3 = scmp.ne.s32.totalorder %s21_s16, %s288_s26  ;;  %p294_p5 = scmp.lt.s32.totalorder %s288_s26, %s288_s26 }
   0xe   :  { %p295_p6 = por %p294_p5, %p293_p4 }
  0x10   :  { %p296_p7 = pnand %p295_p6, %p289_p3 }
  0x12   :  { %299 = shalt.err (!%p296_p7)
}
  0x13   :  { %23 = dma.hbm_to_vmem [thread:$0]  %s502_s0, 128, %s21_s16, [#allocation4]  }
  0x14   :  { %s300_s5 = scalar_lea.hbm %s503_s1, 1024 }
  0x15   :  { %p301_p8 = scmp.ne.s32.totalorder %s503_s1, %s300_s5  ;;  %p304_p9 = scmp.lt.u32.totalorder %s300_s5, %s503_s1 }
  0x17   :  { %p306_p10 = pnand %p304_p9, %p301_p8 }
  0x19   :  { %309 = shalt.err (!%p306_p10)
}
  0x1a   :  { %s310_s10 = scalar_lea.vmem %s433_s18, 1024  ;;  %p315_p12 = scmp.lt.s32.totalorder %s433_s18, %s433_s18 }
  0x1b   :  { %p311_p11 = scmp.ne.s32.totalorder %s433_s18, %s310_s10  ;;  %p316_p13 = scmp.lt.s32.totalorder %s310_s10, %s310_s10 }
  0x1d   :  { %p317_p0 = por %p316_p13, %p315_p12 }
  0x1f   :  { %p318_p1 = pnand %p317_p0, %p311_p11 }
  0x21   :  { %321 = shalt.err (!%p318_p1)
}
  0x22   :  { %s398_s0 = smov 64   ;;  %s399_s11 = smov 4  }
  0x23   :  { %35 = dma.hbm_to_vmem [thread:$0]  %s503_s1, 1024, %s433_s18, [#allocation7], %s398_s0, %s398_s0, %s399_s11  }
  0x24   :  { %388 = dma.done.wait [#allocation4], 128  }
  0x25   :  { %389 = vsyncadd [#allocation4], 4294967168 }
  0x26   :  { %390 = dma.done.wait [#allocation7], 1024  }
  0x27   :  { %391 = vsyncadd [#allocation7], 4294966272  ;;  %v400_v0 = vmov 0.0   ;;  %vm401_vm0 = vmmov 0   ;;  %vm47_vm1 = vcmask 7168   ;;  %v402_v1 = vmov 0  }
  0x28   :  { %235 = vmatprep.subr.bf16.mxu0 %v400_v0  ;;  %251 = vmatprep.mubr.msk.bf16.mxu0 %vm401_vm0, %v400_v0  ;;  %48 = vst.msk [vmem:[#allocation2] sm:$0xff] %vm47_vm1, %v402_v1  ;;  %v270_v2 = vld [vmem:[#allocation6] sm:$0xff]   ;;  %v271_v3 = vld [vmem:[#allocation6 + $0x8] sm:$0xff]   ;;  %v272_v4 = vld [vmem:[#allocation6 + $0x10] sm:$0xff]   ;;  %v403_v12 = vmov 1.0|1.0  }
  0x29   :  { %269 = vset.pattern.permute.xlu0 %v402_v1  ;;  %236 = vmatpush3.bf16.msra.mxu0 %v270_v2  ;;  %v49_v5 = vld [vmem:[#allocation3] sm:$0xff]  ;;  %v274_v8 = vld [vmem:[#allocation6 + $0x20] sm:$0xff]   ;;  %v275_v9 = vld [vmem:[#allocation6 + $0x28] sm:$0xff]   ;;  %s404_s1 = smov [#allocation9]  }
  0x2a   :  { %237 = vmatprep.subr.bf16.mxu0 %v400_v0  ;;  %167 = vst [vmem:[#allocation8] sm:$0xff] %v49_v5  ;;  %v273_v7 = vld [vmem:[#allocation6 + $0x18] sm:$0xff]   ;;  %v276_v10 = vld [vmem:[#allocation6 + $0x30] sm:$0xff]   ;;  %vm50_vm2 = vcmp.ne.s32.totalorder %v49_v5, 0  ;;  %s188_s14 = sshll.u32 %s404_s1, 4  ;;  %s189_s14 = int_to_ptr.vmem [resolvable:$true] %s188_s14 }
  0x2b   :  { %v277_v11 = vld [vmem:[#allocation6 + $0x38] sm:$0xff]   ;;  %vm224_vm3 = vmpackc.low %vm50_vm2, %vm50_vm2  ;;  %v51_v13 = vsel %vm50_vm2, 1, %v402_v1  ;;  %s322_s15 = scalar_lea.vmem %s189_s14, 128  ;;  %p327_p3 = scmp.lt.s32.totalorder %s189_s14, %s189_s14 }
  0x2c   :  { %164 = vst [vmem:[#allocation9] sm:$0xff] %v51_v13  ;;  %p323_p2 = scmp.ne.s32.totalorder %s189_s14, %s322_s15  ;;  %p328_p4 = scmp.lt.s32.totalorder %s322_s15, %s322_s15 }
  0x2d   :  { %238 = vmatpush3.bf16.msra.mxu0 %v271_v3 }
  0x2e   :  { %239 = vmatprep.subr.bf16.mxu0 %v400_v0  ;;  %p329_p5 = por %p328_p4, %p327_p3 }
  0x2f   :  { %v159_v6 = vld [vmem:[#allocation2] sm:$0xff] }
  0x30   :  { %161 = vperm.xlu0 %269, %v159_v6   ;;  %p330_p6 = pnand %p329_p5, %p323_p2 }
  0x31   :  { %240 = vmatpush3.bf16.msra.mxu0 %v272_v4 }
  0x32   :  { %241 = vmatprep.subr.bf16.mxu0 %v400_v0 }
  0x35   :  { %242 = vmatpush3.bf16.msra.mxu0 %v273_v7 }
  0x36   :  { %243 = vmatprep.subr.bf16.mxu0 %v400_v0 }
  0x39   :  { %244 = vmatpush3.bf16.msra.mxu0 %v274_v8 }
  0x3a   :  { %245 = vmatprep.subr.bf16.mxu0 %v400_v0 }
  0x3d   :  { %246 = vmatpush3.bf16.msra.mxu0 %v275_v9 }
  0x3e   :  { %247 = vmatprep.subr.bf16.mxu0 %v400_v0 }
  0x41   :  { %248 = vmatpush3.bf16.msra.mxu0 %v276_v10 }
  0x42   :  { %249 = vmatprep.subr.bf16.mxu0 %v400_v0 }
  0x45   :  { %250 = vmatpush3.bf16.msra.mxu0 %v277_v11 }
  0x48   :  { %252 = vmatmul.mubr.msk.bf16.vlgmr.msra.gmra.mrb[0].mxu0 %vm224_vm3, %v403_v12 }
  0x49   :  { %333 = shalt.err (!%p330_p6)
}
  0x4a   :  { %s334_s18 = scalar_lea.hbm %s505_s3, 128 }
  0x4b   :  { %p335_p7 = scmp.ne.s32.totalorder %s505_s3, %s334_s18  ;;  %p338_p8 = scmp.lt.u32.totalorder %s334_s18, %s505_s3 }
  0x4d   :  { %p340_p9 = pnand %p338_p8, %p335_p7 }
  0x4f   :  { %343 = shalt.err (!%p340_p9)
}
  0x50   :  { %191 = dma.vmem_to_hbm [thread:$0]  %s189_s14, 128, %s505_s3, [#allocation10]  }
  0x51   :  { %s405_s25 = smov [#allocation8]  }
  0x52   :  { %s178_s26 = sshll.u32 %s405_s25, 4  ;;  %s179_s26 = int_to_ptr.vmem [resolvable:$true] %s178_s26 }
  0x53   :  { %s344_s27 = scalar_lea.vmem %s179_s26, 128  ;;  %p349_p11 = scmp.lt.s32.totalorder %s179_s26, %s179_s26 }
  0x54   :  { %p345_p10 = scmp.ne.s32.totalorder %s179_s26, %s344_s27  ;;  %p350_p12 = scmp.lt.s32.totalorder %s344_s27, %s344_s27 }
  0x56   :  { %p351_p13 = por %p350_p12, %p349_p11 }
  0x58   :  { %p352_p0 = pnand %p351_p13, %p345_p10 }
  0x5a   :  { %355 = shalt.err (!%p352_p0)
}
  0x5b   :  { %s356_s30 = scalar_lea.hbm %s504_s2, 128 }
  0x5c   :  { %p357_p1 = scmp.ne.s32.totalorder %s504_s2, %s356_s30  ;;  %p360_p2 = scmp.lt.u32.totalorder %s356_s30, %s504_s2 }
  0x5e   :  { %p362_p3 = pnand %p360_p2, %p357_p1 }
  0x60   :  { %365 = shalt.err (!%p362_p3)
}
  0x61   :  { %181 = dma.vmem_to_hbm [thread:$0]  %s179_s26, 128, %s504_s2, [#allocation5]  }
  0x62   :  { %s406_s10 = smov [#allocation11]   ;;  %s407_s11 = smov 1  }
  0x63   :  { %s198_s0 = sshll.u32 %s406_s10, 4  ;;  %s199_s0 = int_to_ptr.vmem [resolvable:$true] %s198_s0 }
  0x64   :  { %s366_s12 = scalar_lea.vmem %s199_s0, 128  ;;  %p371_p5 = scmp.lt.s32.totalorder %s199_s0, %s199_s0 }
  0x65   :  { %p367_p4 = scmp.ne.s32.totalorder %s199_s0, %s366_s12  ;;  %p372_p6 = scmp.lt.s32.totalorder %s366_s12, %s366_s12 }
  0x67   :  { %p373_p7 = por %p372_p6, %p371_p5 }
  0x69   :  { %p374_p8 = pnand %p373_p7, %p367_p4 }
  0xaf   :  { %v162_v18 = vpop.permute.xlu0 %161 }
 0x11b   :  { %v152_v14 = vpop.f32.mrb[0].mxu0 }
 0x11c   :  { %v255_v15 = vtrunc.f32 %v152_v14  ;;  %v253_v16 = vpop.f32.mrb[1].mxu0 }
 0x11d   :  { %v155_v17 = vpop.f32.mrb[2].mxu0 }
 0x11e   :  { %v256_v19 = vcvt.f32.s32 %v255_v15  ;;  %v254_v20 = vpop.f32.mrb[3].mxu0 }
 0x120   :  { %v163_v21 = vadd.s32 %v256_v19, %v162_v18 }
 0x122   :  { %v165_v22 = vsub.s32 %v163_v21, %v51_v13  ;;  %168 = vrot.lane.b32.xlu0 %v163_v21, %s407_s11 }
 0x124   :  { %166 = vst [vmem:[#allocation11] sm:$0xff] %v165_v22 }
 0x125   :  { %377 = shalt.err (!%p374_p8)
}
 0x126   :  { %s378_s1 = scalar_lea.hbm %s506_s4, 128 }
 0x127   :  { %p379_p9 = scmp.ne.s32.totalorder %s506_s4, %s378_s1  ;;  %p382_p10 = scmp.lt.u32.totalorder %s378_s1, %s506_s4 }
 0x129   :  { %p384_p11 = pnand %p382_p10, %p379_p9 }
 0x12b   :  { %387 = shalt.err (!%p384_p11)
}
 0x12c   :  { %201 = dma.vmem_to_hbm [thread:$0]  %s199_s0, 128, %s506_s4, [#allocation10]  }
 0x194   :  { %v169_v23 = vpop.permute.xlu0 %168 }
 0x195   :  { %171 = vst.msk [vmem:[#allocation2] sm:$0xff] %vm47_vm1, %v169_v23 }
 0x196   :  { %392 = dma.done.wait [#allocation5], 128  }
 0x197   :  { %393 = vsyncadd [#allocation5], 4294967168 }
 0x198   :  { %394 = dma.done.wait [#allocation10], 256  }
 0x199   :  { %395 = vsyncadd [#allocation10], 4294967040 }
 0x19a   :  { %211 = vsyncpa [#allocation4], 1 }
 0x19b   :  { %212 = vsyncpa [#allocation7], 1 }
 0x19c   :  { %213 = vsyncpa [#allocation5], 1 }
 0x19d   :  { %214 = vsyncpa [#allocation10], 1 }

</bundles_post_ra>
